<compile_context>
chip_gen: v7x
topology: tpu7x:2x2x1
jax: 0.10.0
libtpu: 0.0.40
codegen_flags: <defaults>
</compile_context>

<pallas_src>
import functools

import jax
import jax.numpy as jnp
from jax.experimental import pallas as pl
from jax.experimental.pallas import tpu as pltpu


def _round_up(x: int, m: int) -> int:
    return ((x + m - 1) // m) * m


def _device_defaults():
    """Per-TPU-generation defaults: batch tile, scoped-VMEM limit, act dtype."""
    try:
        kind = jax.devices()[0].device_kind.lower()
    except Exception:  # pragma: no cover - be robust on exotic backends
        kind = ""
    if "v5 lite" in kind or "v5lite" in kind or "v5e" in kind:
        # v5e: single TC, 128 MiB VMEM, no bf16 VALU -> f32 intermediates.
        return dict(block_b=512, vmem_limit_bytes=96 * 1024 * 1024,
                    act_dtype=jnp.float32)
    if "v6" in kind:
        # v6e: single TC, 128 MiB VMEM, bf16 VALU -> big serial tiles, bf16 act.
        return dict(block_b=512, vmem_limit_bytes=96 * 1024 * 1024,
                    act_dtype=jnp.bfloat16)
    # v7x (2 TCs, 64 MiB VMEM) or unknown generation: conservative VMEM budget.
    return dict(block_b=256, vmem_limit_bytes=44 * 1024 * 1024,
                act_dtype=jnp.bfloat16)


def _pick_batch_tile(B: int, block_b: int) -> int:
    tb = min(block_b, B)
    # Keep >= 2 batch tiles when the batch allows it, so dimension_semantics
    # ("parallel",) has something to shard across v7x's two TensorCores.
    if B >= 256:
        tb = min(tb, _round_up(-(-B // 2), 128))
    if tb >= 128:
        tb = (tb // 128) * 128        # fill the MXU M dimension
    elif tb >= 16:
        tb = (tb // 16) * 16          # bf16 vregs pack [16,128] sublanes
    else:
        tb = 8
    return tb


def _qnet_kernel(x_ref, w1_ref, b1_ref, w2_ref, b2_ref, w3_ref, b3_ref,
                 w4_ref, b4_ref, o_ref, *, act_dtype):
    """One grid step = one batch tile through the 4-layer MLP (ReLU x3).

    x is the packed obs||actions tile (bf16, lane-dense K).  Weights are bf16,
    MXU accumulation is f32; bias-add + ReLU run in `act_dtype` (bf16 on
    v6e/v7x, f32 on v5e).  All widths are 128-multiples -> unmasked stores.
    """
    x = x_ref[...]                                                   # (TB, Kp) bf16

    h = jnp.dot(x, w1_ref[...], preferred_element_type=jnp.float32)
    h = jnp.maximum(h.astype(act_dtype) + b1_ref[...], 0)           # (TB, H1p)

    h = jnp.dot(h.astype(jnp.bfloat16), w2_ref[...],
                preferred_element_type=jnp.float32)
    h = jnp.maximum(h.astype(act_dtype) + b2_ref[...], 0)           # (TB, H2p)

    h = jnp.dot(h.astype(jnp.bfloat16), w3_ref[...],
                preferred_element_type=jnp.float32)
    h = jnp.maximum(h.astype(act_dtype) + b3_ref[...], 0)           # (TB, H3p)

    h = jnp.dot(h.astype(jnp.bfloat16), w4_ref[...],
                preferred_element_type=jnp.float32) + b4_ref[...]   # (TB, Ap) f32
    o_ref[...] = h.astype(o_ref.dtype)


def qnet_forward(obs, actions, kparams, *, num_atoms, block_b=None,
                 vmem_limit_bytes=None, return_padded=False):
    """Pallas forward of DistributionalQNetwork.

    obs:      (B, n_obs)  float32 (or bf16)
    actions:  (B, n_act)  float32 (or bf16)
    kparams:  lane-dense padded params from prepare_kernel_params().
    Returns (B, num_atoms) f32 logits, or the padded (Bp, Ap) slab when
    return_padded=True (consumer should then mask/slice the atom lanes itself,
    which avoids an extra HBM pass for the slice).
    """
    defaults = _device_defaults()
    if block_b is None:
        block_b = defaults["block_b"]
    if vmem_limit_bytes is None:
        vmem_limit_bytes = defaults["vmem_limit_bytes"]
    act_dtype = kparams["b1"].dtype

    B, n_obs = obs.shape
    n_act = actions.shape[1]
    Kp, H1p = kparams["w1"].shape
    H2p = kparams["w2"].shape[1]
    H3p = kparams["w3"].shape[1]
    Ap = kparams["w4"].shape[1]

    TB = _pick_batch_tile(B, block_b)
    Bp = _round_up(B, TB)

    # Pack obs||actions into one zero-padded, lane-dense bf16 input so layer 1 is
    # a single K=Kp contraction (single fused W1).  This concat/pad/cast is one
    # fused XLA pass over the (small) inputs and halves the in-kernel input DMA
    # bytes vs. two f32 operands.
    x = jnp.concatenate([obs, actions], axis=1).astype(jnp.bfloat16)
    x = jnp.pad(x, ((0, Bp - B), (0, Kp - (n_obs + n_act))))

    grid = (Bp // TB,)

    def resident(arr):
        # Whole array as one block, constant index -> stays in VMEM across all
        # batch tiles.  Buffered(1): no double-buffer for grid-invariant operands.
        return pl.BlockSpec(arr.shape, lambda b: (0, 0),
                            pipeline_mode=pl.Buffered(1))

    flops = 2 * Bp * (Kp * H1p + H1p * H2p + H2p * H3p + H3p * Ap)
    bytes_accessed = (
        int(x.size) * x.dtype.itemsize
        + sum(int(v.size) * v.dtype.itemsize for v in kparams.values())
        + Bp * Ap * 4
    )

    out = pl.pallas_call(
        functools.partial(_qnet_kernel, act_dtype=act_dtype),
        out_shape=jax.ShapeDtypeStruct((Bp, Ap), jnp.float32),
        grid_spec=pltpu.PrefetchScalarGridSpec(
            num_scalar_prefetch=0,
            grid=grid,
            in_specs=[
                pl.BlockSpec((TB, Kp), lambda b: (b, 0)),   # packed input tile
                resident(kparams["w1"]), resident(kparams["b1"]),
                resident(kparams["w2"]), resident(kparams["b2"]),
                resident(kparams["w3"]), resident(kparams["b3"]),
                resident(kparams["w4"]), resident(kparams["b4"]),
            ],
            out_specs=pl.BlockSpec((TB, Ap), lambda b: (b, 0)),
        ),
        compiler_params=pltpu.CompilerParams(
            dimension_semantics=("parallel",),           # batch tiles independent
            vmem_limit_bytes=vmem_limit_bytes,
        ),
        cost_estimate=pl.CostEstimate(
            flops=flops, transcendentals=0, bytes_accessed=bytes_accessed),
    )(x,
      kparams["w1"], kparams["b1"],
      kparams["w2"], kparams["b2"],
      kparams["w3"], kparams["b3"],
      kparams["w4"], kparams["b4"])

    if return_padded:
        return out
    return out[:B, :num_atoms]


def init_qnet_params(key, n_obs, n_act, num_atoms, hidden_dim):
    """PyTorch-style Linear init (U[-1/sqrt(fan_in), 1/sqrt(fan_in)]), weights (in, out)."""
    dims = [(n_obs + n_act, hidden_dim),
            (hidden_dim, hidden_dim // 2),
            (hidden_dim // 2, hidden_dim // 4),
            (hidden_dim // 4, num_atoms)]
    keys = jax.random.split(key, 2 * len(dims))
    params = {}
    for li, (fan_in, fan_out) in enumerate(dims, start=1):
        bound = 1.0 / (fan_in ** 0.5)
        params[f"w{li}"] = jax.random.uniform(
            keys[2 * (li - 1)], (fan_in, fan_out), jnp.float32, -bound, bound)
        params[f"b{li}"] = jax.random.uniform(
            keys[2 * (li - 1) + 1], (1, fan_out), jnp.float32, -bound, bound)
    return params


def prepare_kernel_params(params, n_obs, n_act, num_atoms, hidden_dim,
                          act_dtype=None):
    """One-time prep: keep W1 fused over obs||actions and zero-pad its K to a
    128-multiple; pad every output width to a 128-multiple of lanes; cast
    weights to bf16 and layer-1..3 biases to the activation dtype (final bias /
    output stay f32).  Zero padding preserves the forward numerics exactly."""
    if act_dtype is None:
        act_dtype = _device_defaults()["act_dtype"]
    H1, H2, H3 = hidden_dim, hidden_dim // 2, hidden_dim // 4
    Kp = _round_up(n_obs + n_act, 128)
    H1p, H2p, H3p = _round_up(H1, 128), _round_up(H2, 128), _round_up(H3, 128)
    Ap = _round_up(num_atoms, 128)

    def pad_w(w, rows, cols):
        return jnp.pad(w, ((0, rows - w.shape[0]), (0, cols - w.shape[1]))
                       ).astype(jnp.bfloat16)

    def pad_b(b, cols, dtype):
        return jnp.pad(b, ((0, 0), (0, cols - b.shape[1]))).astype(dtype)

    return {
        "w1": pad_w(params["w1"], Kp, H1p),          # fused obs||act weight
        "b1": pad_b(params["b1"], H1p, act_dtype),
        "w2": pad_w(params["w2"], H1p, H2p),
        "b2": pad_b(params["b2"], H2p, act_dtype),
        "w3": pad_w(params["w3"], H2p, H3p),
        "b3": pad_b(params["b3"], H3p, act_dtype),
        "w4": pad_w(params["w4"], H3p, Ap),
        "b4": pad_b(params["b4"], Ap, jnp.float32),  # final bias / output f32
    }


def reference_forward(obs, actions, params, act_dtype=jnp.bfloat16):
    """Pure-JAX reference with exactly the kernel's precision recipe
    (bf16 weights/inputs, f32 MXU accumulation, act_dtype bias+ReLU)."""
    h = jnp.concatenate([obs, actions], axis=1).astype(jnp.bfloat16)
    for li in range(1, 5):
        w = params[f"w{li}"].astype(jnp.bfloat16)
        acc = jnp.dot(h.astype(jnp.bfloat16), w,
                      preferred_element_type=jnp.float32)
        b = params[f"b{li}"]
        if li < 4:
            h = jnp.maximum(acc.astype(act_dtype) + b.astype(act_dtype), 0)
        else:
            h = acc + b
    return h


if __name__ == "__main__":
    # Small, TPU-friendly shapes consistent with the module's constructor.
    B = 128
    n_obs, n_act = 24, 8
    num_atoms = 16
    hidden_dim = 32
    v_min, v_max = -10.0, 10.0   # used only by projection/get_value, not forward

    key = jax.random.PRNGKey(0)
    kp, ko, ka = jax.random.split(key, 3)
    params = init_qnet_params(kp, n_obs, n_act, num_atoms, hidden_dim)

    act_dtype = _device_defaults()["act_dtype"]
    kparams = prepare_kernel_params(params, n_obs, n_act, num_atoms, hidden_dim,
                                    act_dtype=act_dtype)

    obs = jax.random.normal(ko, (B, n_obs), jnp.float32)
    actions = jax.random.normal(ka, (B, n_act), jnp.float32)

    # Tiny demo shapes: block_b defaults (>= B) collapse the batch grid to one
    # step, so the whole forward is a single pipelined pallas_call invocation.
    fwd = jax.jit(functools.partial(qnet_forward, num_atoms=num_atoms))
    q_logits = fwd(obs, actions, kparams)
    jax.block_until_ready(q_logits)

    ref = reference_forward(obs, actions, params, act_dtype=act_dtype)
    assert q_logits.shape == (B, num_atoms)
    max_err = float(jnp.max(jnp.abs(q_logits - ref)))
    assert jnp.allclose(q_logits, ref, atol=1e-2, rtol=1e-2), max_err

    print("KERNEL_OK")
</pallas_src>

<mosaic_0001>
module attributes {stable_mosaic.version = 11 : i64} {
  func.func @_qnet_kernel(%arg0: i32, %arg1: memref<128x128xbf16, #tpu.memory_space<vmem>>, %arg2: memref<128x128xbf16, #tpu.memory_space<vmem>>, %arg3: memref<1x128xbf16, #tpu.memory_space<vmem>>, %arg4: memref<128x128xbf16, #tpu.memory_space<vmem>>, %arg5: memref<1x128xbf16, #tpu.memory_space<vmem>>, %arg6: memref<128x128xbf16, #tpu.memory_space<vmem>>, %arg7: memref<1x128xbf16, #tpu.memory_space<vmem>>, %arg8: memref<128x128xbf16, #tpu.memory_space<vmem>>, %arg9: memref<1x128xf32, #tpu.memory_space<vmem>>, %arg10: memref<128x128xf32, #tpu.memory_space<vmem>>) attributes {dimension_semantics = [#tpu.dimension_semantics<parallel>], iteration_bounds = array<i64: 1>, scalar_prefetch = 0 : i64, scratch_operands = 0 : i64, tpu.core_type = #tpu.core_type<tc>, window_params = [{transform_indices = @transform_0, window_bounds = array<i64: 128, 128>}, {pipeline_mode = #tpu.pipeline_mode<synchronous>, transform_indices = @transform_1, window_bounds = array<i64: 128, 128>}, {pipeline_mode = #tpu.pipeline_mode<synchronous>, transform_indices = @transform_2, window_bounds = array<i64: 1, 128>}, {pipeline_mode = #tpu.pipeline_mode<synchronous>, transform_indices = @transform_3, window_bounds = array<i64: 128, 128>}, {pipeline_mode = #tpu.pipeline_mode<synchronous>, transform_indices = @transform_4, window_bounds = array<i64: 1, 128>}, {pipeline_mode = #tpu.pipeline_mode<synchronous>, transform_indices = @transform_5, window_bounds = array<i64: 128, 128>}, {pipeline_mode = #tpu.pipeline_mode<synchronous>, transform_indices = @transform_6, window_bounds = array<i64: 1, 128>}, {pipeline_mode = #tpu.pipeline_mode<synchronous>, transform_indices = @transform_7, window_bounds = array<i64: 128, 128>}, {pipeline_mode = #tpu.pipeline_mode<synchronous>, transform_indices = @transform_8, window_bounds = array<i64: 1, 128>}, {transform_indices = @transform_9, window_bounds = array<i64: 128, 128>}]} {
    %c0 = arith.constant 0 : index
    %c0_0 = arith.constant 0 : index
    %0 = vector.load %arg1[%c0, %c0_0] : memref<128x128xbf16, #tpu.memory_space<vmem>>, vector<128x128xbf16>
    %c0_1 = arith.constant 0 : index
    %c0_2 = arith.constant 0 : index
    %1 = vector.load %arg2[%c0_1, %c0_2] : memref<128x128xbf16, #tpu.memory_space<vmem>>, vector<128x128xbf16>
    %cst = arith.constant dense<0.000000e+00> : vector<128x128xf32>
    %2 = tpu.matmul %0, %1, %cst {dimension_numbers = #tpu.dot_dimension_numbers<[1], [0], [0], [1], [0, 0, 1, 1], [], []>} : vector<128x128xbf16>, vector<128x128xbf16>, vector<128x128xf32> -> vector<128x128xf32>
    %3 = arith.truncf %2 : vector<128x128xf32> to vector<128x128xbf16>
    %c0_3 = arith.constant 0 : index
    %c0_4 = arith.constant 0 : index
    %4 = vector.load %arg3[%c0_3, %c0_4] : memref<1x128xbf16, #tpu.memory_space<vmem>>, vector<1x128xbf16>
    %5 = vector.broadcast %4 : vector<1x128xbf16> to vector<128x128xbf16>
    %6 = arith.addf %3, %5 : vector<128x128xbf16>
    %cst_5 = arith.constant 0.000000e+00 : bf16
    %7 = vector.broadcast %cst_5 : bf16 to vector<128x128xbf16>
    %8 = arith.maximumf %6, %7 : vector<128x128xbf16>
    %c0_6 = arith.constant 0 : index
    %c0_7 = arith.constant 0 : index
    %9 = vector.load %arg4[%c0_6, %c0_7] : memref<128x128xbf16, #tpu.memory_space<vmem>>, vector<128x128xbf16>
    %cst_8 = arith.constant dense<0.000000e+00> : vector<128x128xf32>
    %10 = tpu.matmul %8, %9, %cst_8 {dimension_numbers = #tpu.dot_dimension_numbers<[1], [0], [0], [1], [0, 0, 1, 1], [], []>} : vector<128x128xbf16>, vector<128x128xbf16>, vector<128x128xf32> -> vector<128x128xf32>
    %11 = arith.truncf %10 : vector<128x128xf32> to vector<128x128xbf16>
    %c0_9 = arith.constant 0 : index
    %c0_10 = arith.constant 0 : index
    %12 = vector.load %arg5[%c0_9, %c0_10] : memref<1x128xbf16, #tpu.memory_space<vmem>>, vector<1x128xbf16>
    %13 = vector.broadcast %12 : vector<1x128xbf16> to vector<128x128xbf16>
    %14 = arith.addf %11, %13 : vector<128x128xbf16>
    %cst_11 = arith.constant 0.000000e+00 : bf16
    %15 = vector.broadcast %cst_11 : bf16 to vector<128x128xbf16>
    %16 = arith.maximumf %14, %15 : vector<128x128xbf16>
    %c0_12 = arith.constant 0 : index
    %c0_13 = arith.constant 0 : index
    %17 = vector.load %arg6[%c0_12, %c0_13] : memref<128x128xbf16, #tpu.memory_space<vmem>>, vector<128x128xbf16>
    %cst_14 = arith.constant dense<0.000000e+00> : vector<128x128xf32>
    %18 = tpu.matmul %16, %17, %cst_14 {dimension_numbers = #tpu.dot_dimension_numbers<[1], [0], [0], [1], [0, 0, 1, 1], [], []>} : vector<128x128xbf16>, vector<128x128xbf16>, vector<128x128xf32> -> vector<128x128xf32>
    %19 = arith.truncf %18 : vector<128x128xf32> to vector<128x128xbf16>
    %c0_15 = arith.constant 0 : index
    %c0_16 = arith.constant 0 : index
    %20 = vector.load %arg7[%c0_15, %c0_16] : memref<1x128xbf16, #tpu.memory_space<vmem>>, vector<1x128xbf16>
    %21 = vector.broadcast %20 : vector<1x128xbf16> to vector<128x128xbf16>
    %22 = arith.addf %19, %21 : vector<128x128xbf16>
    %cst_17 = arith.constant 0.000000e+00 : bf16
    %23 = vector.broadcast %cst_17 : bf16 to vector<128x128xbf16>
    %24 = arith.maximumf %22, %23 : vector<128x128xbf16>
    %c0_18 = arith.constant 0 : index
    %c0_19 = arith.constant 0 : index
    %25 = vector.load %arg8[%c0_18, %c0_19] : memref<128x128xbf16, #tpu.memory_space<vmem>>, vector<128x128xbf16>
    %cst_20 = arith.constant dense<0.000000e+00> : vector<128x128xf32>
    %26 = tpu.matmul %24, %25, %cst_20 {dimension_numbers = #tpu.dot_dimension_numbers<[1], [0], [0], [1], [0, 0, 1, 1], [], []>} : vector<128x128xbf16>, vector<128x128xbf16>, vector<128x128xf32> -> vector<128x128xf32>
    %c0_21 = arith.constant 0 : index
    %c0_22 = arith.constant 0 : index
    %27 = vector.load %arg9[%c0_21, %c0_22] : memref<1x128xf32, #tpu.memory_space<vmem>>, vector<1x128xf32>
    %28 = vector.broadcast %27 : vector<1x128xf32> to vector<128x128xf32>
    %29 = arith.addf %26, %28 : vector<128x128xf32>
    %c0_23 = arith.constant 0 : index
    %c0_24 = arith.constant 0 : index
    %30 = vector.load %arg10[%c0_23, %c0_24] : memref<128x128xf32, #tpu.memory_space<vmem>>, vector<128x128xf32>
    tpu.vector_store %arg10[%c0_23, %c0_24], %29 {strides = array<i32>} : memref<128x128xf32, #tpu.memory_space<vmem>>, vector<128x128xf32>,
    return
  }
  func.func @transform_0(%arg0: i32) -> (i32, i32) {
    %c0_i32 = arith.constant 0 : i32
    %c0_i32_0 = arith.constant 0 : i32
    return %arg0, %c0_i32 : i32, i32
  }
  func.func @transform_1(%arg0: i32) -> (i32, i32) {
    %c0_i32 = arith.constant 0 : i32
    %c0_i32_0 = arith.constant 0 : i32
    %c0_i32_1 = arith.constant 0 : i32
    return %c0_i32, %c0_i32_0 : i32, i32
  }
  func.func @transform_2(%arg0: i32) -> (i32, i32) {
    %c0_i32 = arith.constant 0 : i32
    %c0_i32_0 = arith.constant 0 : i32
    %c0_i32_1 = arith.constant 0 : i32
    return %c0_i32, %c0_i32_0 : i32, i32
  }
  func.func @transform_3(%arg0: i32) -> (i32, i32) {
    %c0_i32 = arith.constant 0 : i32
    %c0_i32_0 = arith.constant 0 : i32
    %c0_i32_1 = arith.constant 0 : i32
    return %c0_i32, %c0_i32_0 : i32, i32
  }
  func.func @transform_4(%arg0: i32) -> (i32, i32) {
    %c0_i32 = arith.constant 0 : i32
    %c0_i32_0 = arith.constant 0 : i32
    %c0_i32_1 = arith.constant 0 : i32
    return %c0_i32, %c0_i32_0 : i32, i32
  }
  func.func @transform_5(%arg0: i32) -> (i32, i32) {
    %c0_i32 = arith.constant 0 : i32
    %c0_i32_0 = arith.constant 0 : i32
    %c0_i32_1 = arith.constant 0 : i32
    return %c0_i32, %c0_i32_0 : i32, i32
  }
  func.func @transform_6(%arg0: i32) -> (i32, i32) {
    %c0_i32 = arith.constant 0 : i32
    %c0_i32_0 = arith.constant 0 : i32
    %c0_i32_1 = arith.constant 0 : i32
    return %c0_i32, %c0_i32_0 : i32, i32
  }
  func.func @transform_7(%arg0: i32) -> (i32, i32) {
    %c0_i32 = arith.constant 0 : i32
    %c0_i32_0 = arith.constant 0 : i32
    %c0_i32_1 = arith.constant 0 : i32
    return %c0_i32, %c0_i32_0 : i32, i32
  }
  func.func @transform_8(%arg0: i32) -> (i32, i32) {
    %c0_i32 = arith.constant 0 : i32
    %c0_i32_0 = arith.constant 0 : i32
    %c0_i32_1 = arith.constant 0 : i32
    return %c0_i32, %c0_i32_0 : i32, i32
  }
  func.func @transform_9(%arg0: i32) -> (i32, i32) {
    %c0_i32 = arith.constant 0 : i32
    %c0_i32_0 = arith.constant 0 : i32
    return %arg0, %c0_i32 : i32, i32
  }
}

</mosaic_0001>

<bundles_post_ra>
// kernel: qnet_forward.1
= control target key start
LH: loop header
LB: loop body
LE: loop exit
PB: predicated region body
PF: predicated region fallthrough
CT: control target
= control target key end

     0   :  { %v270_v30 = vlaneseq  ;;  %v1138_v45 = vmov 0   ;;  %s1398_s1 = inlined_call_operand.vmem [shape: bf16[128,128], index: 1, kind: input, shape index: {}]   ;;  %s1399_s0 = inlined_call_operand.vmem [shape: bf16[128,128], index: 0, kind: input, shape index: {}]   ;;  %s1400_s3 = inlined_call_operand.vmem [shape: bf16[128,128], index: 3, kind: input, shape index: {}]   ;;  %s1401_s5 = inlined_call_operand.vmem [shape: bf16[128,128], index: 5, kind: input, shape index: {}]   ;;  %s1402_s2 = inlined_call_operand.vmem [shape: bf16[1,128], index: 2, kind: input, shape index: {}]   ;;  %s1403_s7 = inlined_call_operand.vmem [shape: bf16[128,128], index: 7, kind: input, shape index: {}]   ;;  %s1404_s4 = inlined_call_operand.vmem [shape: bf16[1,128], index: 4, kind: input, shape index: {}]   ;;  %s1405_s6 = inlined_call_operand.vmem [shape: bf16[1,128], index: 6, kind: input, shape index: {}]   ;;  %s1406_s8 = inlined_call_operand.vmem [shape: f32[1,128], index: 8, kind: input, shape index: {}]   ;;  %s1407_s9 = inlined_call_operand.vmem [shape: f32[128,128], index: 9, kind: output, shape index: {}]  }
   0x1   :  { %v1098_v0 = vld [vmem:[%s1398_s1] sm:$0xff]   ;;  %v1099_v1 = vld [vmem:[%s1398_s1 + $0x8] sm:$0xff]   ;;  %v1100_v2 = vld [vmem:[%s1398_s1 + $0x10] sm:$0xff]  }
   0x2   :  { %969 = vmatprep.subr.bf16.mxu0 %v1098_v0  ;;  %v1101_v3 = vld [vmem:[%s1398_s1 + $0x18] sm:$0xff]   ;;  %v1106_v4 = vld [vmem:[%s1399_s0] sm:$0xff]   ;;  %v1103_v6 = vld [vmem:[%s1398_s1 + $0x28] sm:$0xff]   ;;  %v271_v31 = vshrl.u32 %v270_v30, 7 }
   0x3   :  { %970 = vmatpush3.bf16.msra.mxu0 %v1098_v0  ;;  %985 = vmatprep.mubr.bf16.mxu0 %v1106_v4  ;;  %v1102_v5 = vld [vmem:[%s1398_s1 + $0x20] sm:$0xff]   ;;  %v1115_v8 = vld [vmem:[%s1400_s3 + $0x8] sm:$0xff]   ;;  %v1104_v9 = vld [vmem:[%s1398_s1 + $0x30] sm:$0xff]  }
   0x4   :  { %971 = vmatprep.subr.bf16.mxu0 %v1099_v1  ;;  %v1114_v7 = vld [vmem:[%s1400_s3] sm:$0xff]   ;;  %v1116_v10 = vld [vmem:[%s1400_s3 + $0x10] sm:$0xff]   ;;  %v1105_v11 = vld [vmem:[%s1398_s1 + $0x38] sm:$0xff]   ;;  %v1282_v34 = vsub.s32 0, %v271_v31 }
   0x5   :  { %1001 = vmatprep.subr.bf16.mxu1 %v1114_v7  ;;  %v1117_v12 = vld [vmem:[%s1400_s3 + $0x18] sm:$0xff]   ;;  %v1118_v13 = vld [vmem:[%s1400_s3 + $0x20] sm:$0xff]   ;;  %v1107_v14 = vld [vmem:[%s1399_s0 + $0x8] sm:$0xff]  }
   0x6   :  { %1002 = vmatpush3.bf16.msra.mxu1 %v1114_v7  ;;  %v1108_v15 = vld [vmem:[%s1399_s0 + $0x10] sm:$0xff]   ;;  %v1119_v16 = vld [vmem:[%s1400_s3 + $0x28] sm:$0xff]   ;;  %v1109_v17 = vld [vmem:[%s1399_s0 + $0x18] sm:$0xff]  }
   0x7   :  { %972 = vmatpush3.bf16.msra.mxu0 %v1099_v1  ;;  %1003 = vmatprep.subr.bf16.mxu1 %v1115_v8  ;;  %v1110_v18 = vld [vmem:[%s1399_s0 + $0x20] sm:$0xff]   ;;  %v1111_v19 = vld [vmem:[%s1399_s0 + $0x28] sm:$0xff]   ;;  %v1112_v20 = vld [vmem:[%s1399_s0 + $0x30] sm:$0xff]  }
   0x8   :  { %973 = vmatprep.subr.bf16.mxu0 %v1100_v2  ;;  %v1113_v21 = vld [vmem:[%s1399_s0 + $0x38] sm:$0xff]   ;;  %v1120_v22 = vld [vmem:[%s1400_s3 + $0x30] sm:$0xff]   ;;  %v1122_v24 = vld [vmem:[%s1401_s5] sm:$0xff]  }
   0x9   :  { %v1121_v23 = vld [vmem:[%s1400_s3 + $0x38] sm:$0xff]   ;;  %v1123_v25 = vld [vmem:[%s1401_s5 + $0x8] sm:$0xff]   ;;  %v1124_v26 = vld [vmem:[%s1401_s5 + $0x10] sm:$0xff]  }
   0xa   :  { %1004 = vmatpush3.bf16.msra.mxu1 %v1115_v8  ;;  %v1125_v27 = vld [vmem:[%s1401_s5 + $0x18] sm:$0xff]   ;;  %v1126_v28 = vld [vmem:[%s1401_s5 + $0x20] sm:$0xff]   ;;  %v1127_v29 = vld [vmem:[%s1401_s5 + $0x28] sm:$0xff]  }
   0xb   :  { %974 = vmatpush3.bf16.msra.mxu0 %v1100_v2  ;;  %1005 = vmatprep.subr.bf16.mxu1 %v1116_v10  ;;  %v266_v32 = vld [vmem:[%s1402_s2] sm:$0x1] }
   0xc   :  { %975 = vmatprep.subr.bf16.mxu0 %v1101_v3  ;;  %v268_v33 = vpack.i.b16 %v266_v32, %v266_v32 }
   0xe   :  { %1006 = vmatpush3.bf16.msra.mxu1 %v1116_v10  ;;  %v273_v37 = vrot.slane %v268_v33, %v1282_v34 }
   0xf   :  { %976 = vmatpush3.bf16.msra.mxu0 %v1101_v3  ;;  %1007 = vmatprep.subr.bf16.mxu1 %v1117_v12 }
  0x10   :  { %977 = vmatprep.subr.bf16.mxu0 %v1102_v5 }
  0x12   :  { %1008 = vmatpush3.bf16.msra.mxu1 %v1117_v12 }
  0x13   :  { %978 = vmatpush3.bf16.msra.mxu0 %v1102_v5  ;;  %1009 = vmatprep.subr.bf16.mxu1 %v1118_v13 }
  0x14   :  { %979 = vmatprep.subr.bf16.mxu0 %v1103_v6 }
  0x16   :  { %1010 = vmatpush3.bf16.msra.mxu1 %v1118_v13  ;;  %v1128_v13 = vld [vmem:[%s1401_s5 + $0x30] sm:$0xff]  }
  0x17   :  { %980 = vmatpush3.bf16.msra.mxu0 %v1103_v6  ;;  %1011 = vmatprep.subr.bf16.mxu1 %v1119_v16 }
  0x18   :  { %981 = vmatprep.subr.bf16.mxu0 %v1104_v9 }
  0x1a   :  { %1012 = vmatpush3.bf16.msra.mxu1 %v1119_v16  ;;  %v1131_v16 = vld [vmem:[%s1403_s7 + $0x8] sm:$0xff]  }
  0x1b   :  { %982 = vmatpush3.bf16.msra.mxu0 %v1104_v9  ;;  %1013 = vmatprep.subr.bf16.mxu1 %v1120_v22 }
  0x1c   :  { %983 = vmatprep.subr.bf16.mxu0 %v1105_v11 }
  0x1e   :  { %1014 = vmatpush3.bf16.msra.mxu1 %v1120_v22 }
  0x1f   :  { %984 = vmatpush3.bf16.msra.mxu0 %v1105_v11  ;;  %1015 = vmatprep.subr.bf16.mxu1 %v1121_v23 }
  0x20   :  { %1033 = vmatprep.subr.bf16.mxu0 %v1122_v24 }
  0x22   :  { %986 = vmatmul.mubr.bf16.vlgmr.msra.gmra.mrb[0].mxu0 %v1107_v14  ;;  %1016 = vmatpush3.bf16.msra.mxu1 %v1121_v23  ;;  %v1129_v14 = vld [vmem:[%s1401_s5 + $0x38] sm:$0xff]  }
  0x23   :  { %989 = vmatprep.mubr.bf16.mxu0 %v1108_v15  ;;  %1034 = vmatpush3.bf16.msra.mxu0 %v1122_v24  ;;  %v1130_v15 = vld [vmem:[%s1403_s7] sm:$0xff]  }
  0x24   :  { %1035 = vmatprep.subr.bf16.mxu0 %v1123_v25  ;;  %1065 = vmatprep.subr.bf16.mxu1 %v1130_v15 }
  0x27   :  { %1036 = vmatpush3.bf16.msra.mxu0 %v1123_v25 }
  0x28   :  { %1037 = vmatprep.subr.bf16.mxu0 %v1124_v26 }
  0x2a   :  { %990 = vmatmul.mubr.bf16.gmra.mrb[4].mxu0 %v1109_v17  ;;  %v1132_v17 = vld [vmem:[%s1403_s7 + $0x10] sm:$0xff]  }
  0x2b   :  { %993 = vmatprep.mubr.bf16.mxu0 %v1110_v18  ;;  %1038 = vmatpush3.bf16.msra.mxu0 %v1124_v26  ;;  %v1133_v18 = vld [vmem:[%s1403_s7 + $0x18] sm:$0xff]  }
  0x2c   :  { %1039 = vmatprep.subr.bf16.mxu0 %v1125_v27 }
  0x2f   :  { %1040 = vmatpush3.bf16.msra.mxu0 %v1125_v27 }
  0x30   :  { %1041 = vmatprep.subr.bf16.mxu0 %v1126_v28 }
  0x32   :  { %994 = vmatmul.mubr.bf16.gmra.mrb[8].mxu0 %v1111_v19  ;;  %v1134_v19 = vld [vmem:[%s1403_s7 + $0x20] sm:$0xff]  }
  0x33   :  { %997 = vmatprep.mubr.bf16.mxu0 %v1112_v20  ;;  %1042 = vmatpush3.bf16.msra.mxu0 %v1126_v28  ;;  %v1135_v20 = vld [vmem:[%s1403_s7 + $0x28] sm:$0xff]  }
  0x34   :  { %1043 = vmatprep.subr.bf16.mxu0 %v1127_v29 }
  0x37   :  { %1044 = vmatpush3.bf16.msra.mxu0 %v1127_v29 }
  0x38   :  { %1045 = vmatprep.subr.bf16.mxu0 %v1128_v13 }
  0x3a   :  { %998 = vmatmul.mubr.bf16.gmra.mrb[12].mxu0 %v1113_v21  ;;  %v459_v21 = vld [vmem:[%s1404_s4] sm:$0x1] }
  0x3b   :  { %1046 = vmatpush3.bf16.msra.mxu0 %v1128_v13  ;;  %v461_v22 = vpack.i.b16 %v459_v21, %v459_v21 }
  0x3c   :  { %1047 = vmatprep.subr.bf16.mxu0 %v1129_v14 }
  0x3d   :  { %v466_v25 = vrot.slane %v461_v22, %v1282_v34 }
  0x3f   :  { %1048 = vmatpush3.bf16.msra.mxu0 %v1129_v14 }
  0xf5   :  { %v987_v35 = vpop.f32.mrb[0].mxu0 }
  0xf6   :  { %v195_v36 = vpop.f32.mrb[1].mxu0 }
  0xf7   :  { %v988_v38 = vpop.f32.mrb[2].mxu0 }
  0xf8   :  { %v259_v39 = vpack.c.bf16 %v988_v38, %v987_v35  ;;  %v198_v40 = vpop.f32.mrb[3].mxu0 }
  0xf9   :  { %v258_v41 = vpack.c.bf16 %v198_v40, %v195_v36 }
  0xfa   :  { %v275_v42 = vadd.bf16 %v273_v37, %v259_v39 }
  0xfb   :  { %v274_v43 = vadd.bf16 %v273_v37, %v258_v41 }
  0xfc   :  { %v283_v48 = vmax.bf16 %v1138_v45, %v275_v42 }
  0xfd   :  { %v991_v44 = vpop.f32.mrb[4].mxu0  ;;  %v282_v46 = vmax.bf16 %v1138_v45, %v274_v43 }
  0xfe   :  { %v211_v47 = vpop.f32.mrb[5].mxu0 }
  0xff   :  { %v992_v49 = vpop.f32.mrb[6].mxu0  ;;  %1017 = vmatprep.mubr.bf16.mxu1 %v282_v46 }
 0x100   :  { %v261_v50 = vpack.c.bf16 %v992_v49, %v991_v44  ;;  %v214_v51 = vpop.f32.mrb[7].mxu0  ;;  %1018 = vmatmul.mubr.bf16.vlgmr.msra.gmra.mrb[0].mxu1 %v283_v48 }
 0x101   :  { %v260_v52 = vpack.c.bf16 %v214_v51, %v211_v47  ;;  %1066 = vmatpush3.bf16.msra.mxu1 %v1130_v15 }
 0x102   :  { %v277_v53 = vadd.bf16 %v273_v37, %v261_v50  ;;  %1067 = vmatprep.subr.bf16.mxu1 %v1131_v16 }
 0x103   :  { %v276_v54 = vadd.bf16 %v273_v37, %v260_v52 }
 0x104   :  { %v285_v58 = vmax.bf16 %v1138_v45, %v277_v53 }
 0x105   :  { %v995_v55 = vpop.f32.mrb[8].mxu0  ;;  %v284_v56 = vmax.bf16 %v1138_v45, %v276_v54  ;;  %1068 = vmatpush3.bf16.msra.mxu1 %v1131_v16 }
 0x106   :  { %v227_v57 = vpop.f32.mrb[9].mxu0  ;;  %1069 = vmatprep.subr.bf16.mxu1 %v1132_v17 }
 0x107   :  { %v996_v59 = vpop.f32.mrb[10].mxu0  ;;  %1021 = vmatprep.mubr.bf16.mxu1 %v284_v56 }
 0x108   :  { %v263_v60 = vpack.c.bf16 %v996_v59, %v995_v55  ;;  %v230_v61 = vpop.f32.mrb[11].mxu0  ;;  %1022 = vmatmul.mubr.bf16.gmra.mrb[4].mxu1 %v285_v58 }
 0x109   :  { %v262_v62 = vpack.c.bf16 %v230_v61, %v227_v57  ;;  %1070 = vmatpush3.bf16.msra.mxu1 %v1132_v17 }
 0x10a   :  { %v279_v63 = vadd.bf16 %v273_v37, %v263_v60  ;;  %1071 = vmatprep.subr.bf16.mxu1 %v1133_v18 }
 0x10b   :  { %v278_v0 = vadd.bf16 %v273_v37, %v262_v62 }
 0x10c   :  { %v287_v4 = vmax.bf16 %v1138_v45, %v279_v63 }
 0x10d   :  { %v999_v1 = vpop.f32.mrb[12].mxu0  ;;  %v286_v2 = vmax.bf16 %v1138_v45, %v278_v0  ;;  %1072 = vmatpush3.bf16.msra.mxu1 %v1133_v18 }
 0x10e   :  { %v243_v3 = vpop.f32.mrb[13].mxu0  ;;  %1073 = vmatprep.subr.bf16.mxu1 %v1134_v19 }
 0x10f   :  { %v1000_v5 = vpop.f32.mrb[14].mxu0  ;;  %1025 = vmatprep.mubr.bf16.mxu1 %v286_v2  ;;  %v1136_v2 = vld [vmem:[%s1403_s7 + $0x30] sm:$0xff]  }
 0x110   :  { %v265_v6 = vpack.c.bf16 %v1000_v5, %v999_v1  ;;  %v246_v7 = vpop.f32.mrb[15].mxu0  ;;  %1026 = vmatmul.mubr.bf16.gmra.mrb[8].mxu1 %v287_v4  ;;  %v652_v4 = vld [vmem:[%s1405_s6] sm:$0x1] }
 0x111   :  { %v264_v8 = vpack.c.bf16 %v246_v7, %v243_v3  ;;  %1074 = vmatpush3.bf16.msra.mxu1 %v1134_v19  ;;  %v1137_v3 = vld [vmem:[%s1403_s7 + $0x38] sm:$0xff]   ;;  %v654_v5 = vpack.i.b16 %v652_v4, %v652_v4 }
 0x112   :  { %v281_v9 = vadd.bf16 %v273_v37, %v265_v6  ;;  %1075 = vmatprep.subr.bf16.mxu1 %v1135_v20 }
 0x113   :  { %v280_v10 = vadd.bf16 %v273_v37, %v264_v8  ;;  %v659_v8 = vrot.slane %v654_v5, %v1282_v34 }
 0x114   :  { %v289_v12 = vmax.bf16 %v1138_v45, %v281_v9 }
 0x115   :  { %v288_v11 = vmax.bf16 %v1138_v45, %v280_v10  ;;  %1076 = vmatpush3.bf16.msra.mxu1 %v1135_v20 }
 0x116   :  { %1077 = vmatprep.subr.bf16.mxu1 %v1136_v2 }
 0x117   :  { %1029 = vmatprep.mubr.bf16.mxu1 %v288_v11 }
 0x118   :  { %1030 = vmatmul.mubr.bf16.gmra.mrb[12].mxu1 %v289_v12 }
 0x119   :  { %1078 = vmatpush3.bf16.msra.mxu1 %v1136_v2 }
 0x11a   :  { %1079 = vmatprep.subr.bf16.mxu1 %v1137_v3 }
 0x11d   :  { %1080 = vmatpush3.bf16.msra.mxu1 %v1137_v3 }
 0x1d3   :  { %v1019_v23 = vpop.f32.mrb[0].mxu1 }
 0x1d4   :  { %v388_v24 = vpop.f32.mrb[1].mxu1 }
 0x1d5   :  { %v1020_v26 = vpop.f32.mrb[2].mxu1 }
 0x1d6   :  { %v452_v27 = vpack.c.bf16 %v1020_v26, %v1019_v23  ;;  %v391_v28 = vpop.f32.mrb[3].mxu1 }
 0x1d7   :  { %v451_v29 = vpack.c.bf16 %v391_v28, %v388_v24 }
 0x1d8   :  { %v468_v30 = vadd.bf16 %v466_v25, %v452_v27 }
 0x1d9   :  { %v467_v31 = vadd.bf16 %v466_v25, %v451_v29 }
 0x1da   :  { %v476_v35 = vmax.bf16 %v1138_v45, %v468_v30 }
 0x1db   :  { %v1023_v32 = vpop.f32.mrb[4].mxu1  ;;  %v475_v33 = vmax.bf16 %v1138_v45, %v467_v31 }
 0x1dc   :  { %v404_v36 = vpop.f32.mrb[5].mxu1 }
 0x1dd   :  { %v1024_v37 = vpop.f32.mrb[6].mxu1  ;;  %1049 = vmatprep.mubr.bf16.mxu0 %v475_v33 }
 0x1de   :  { %v454_v38 = vpack.c.bf16 %v1024_v37, %v1023_v32  ;;  %v407_v39 = vpop.f32.mrb[7].mxu1  ;;  %1050 = vmatmul.mubr.bf16.vlgmr.msra.gmra.mrb[16].mxu0 %v476_v35 }
 0x1df   :  { %v453_v40 = vpack.c.bf16 %v407_v39, %v404_v36 }
 0x1e0   :  { %v470_v41 = vadd.bf16 %v466_v25, %v454_v38 }
 0x1e1   :  { %v469_v42 = vadd.bf16 %v466_v25, %v453_v40 }
 0x1e2   :  { %v478_v47 = vmax.bf16 %v1138_v45, %v470_v41 }
 0x1e3   :  { %v1027_v43 = vpop.f32.mrb[8].mxu1  ;;  %v477_v44 = vmax.bf16 %v1138_v45, %v469_v42 }
 0x1e4   :  { %v420_v46 = vpop.f32.mrb[9].mxu1 }
 0x1e5   :  { %v1028_v48 = vpop.f32.mrb[10].mxu1  ;;  %1053 = vmatprep.mubr.bf16.mxu0 %v477_v44 }
 0x1e6   :  { %v456_v49 = vpack.c.bf16 %v1028_v48, %v1027_v43  ;;  %v423_v50 = vpop.f32.mrb[11].mxu1  ;;  %1054 = vmatmul.mubr.bf16.gmra.mrb[20].mxu0 %v478_v47  ;;  %v896_v48 = vld [vmem:[%s1406_s8] ss:$0 sm:$0xff] }
 0x1e7   :  { %v455_v51 = vpack.c.bf16 %v423_v50, %v420_v46 }
 0x1e8   :  { %v472_v52 = vadd.bf16 %v466_v25, %v456_v49 }
 0x1e9   :  { %v471_v53 = vadd.bf16 %v466_v25, %v455_v51 }
 0x1ea   :  { %v480_v57 = vmax.bf16 %v1138_v45, %v472_v52 }
 0x1eb   :  { %v1031_v54 = vpop.f32.mrb[12].mxu1  ;;  %v479_v55 = vmax.bf16 %v1138_v45, %v471_v53 }
 0x1ec   :  { %v436_v56 = vpop.f32.mrb[13].mxu1 }
 0x1ed   :  { %v1032_v58 = vpop.f32.mrb[14].mxu1  ;;  %1057 = vmatprep.mubr.bf16.mxu0 %v479_v55 }
 0x1ee   :  { %v458_v59 = vpack.c.bf16 %v1032_v58, %v1031_v54  ;;  %v439_v60 = vpop.f32.mrb[15].mxu1  ;;  %1058 = vmatmul.mubr.bf16.gmra.mrb[24].mxu0 %v480_v57 }
 0x1ef   :  { %v457_v61 = vpack.c.bf16 %v439_v60, %v436_v56 }
 0x1f0   :  { %v474_v62 = vadd.bf16 %v466_v25, %v458_v59 }
 0x1f1   :  { %v473_v63 = vadd.bf16 %v466_v25, %v457_v61 }
 0x1f2   :  { %v482_v1 = vmax.bf16 %v1138_v45, %v474_v62 }
 0x1f3   :  { %v481_v0 = vmax.bf16 %v1138_v45, %v473_v63 }
 0x1f5   :  { %1061 = vmatprep.mubr.bf16.mxu0 %v481_v0 }
 0x1f6   :  { %1062 = vmatmul.mubr.bf16.gmra.mrb[28].mxu0 %v482_v1 }
 0x2b1   :  { %v1051_v6 = vpop.f32.mrb[16].mxu0 }
 0x2b2   :  { %v581_v7 = vpop.f32.mrb[17].mxu0 }
 0x2b3   :  { %v1052_v9 = vpop.f32.mrb[18].mxu0 }
 0x2b4   :  { %v645_v10 = vpack.c.bf16 %v1052_v9, %v1051_v6  ;;  %v584_v11 = vpop.f32.mrb[19].mxu0 }
 0x2b5   :  { %v644_v12 = vpack.c.bf16 %v584_v11, %v581_v7 }
 0x2b6   :  { %v661_v13 = vadd.bf16 %v659_v8, %v645_v10 }
 0x2b7   :  { %v660_v14 = vadd.bf16 %v659_v8, %v644_v12 }
 0x2b8   :  { %v669_v17 = vmax.bf16 %v1138_v45, %v661_v13 }
 0x2b9   :  { %v1055_v15 = vpop.f32.mrb[20].mxu0  ;;  %v668_v16 = vmax.bf16 %v1138_v45, %v660_v14 }
 0x2ba   :  { %v597_v18 = vpop.f32.mrb[21].mxu0 }
 0x2bb   :  { %v1056_v19 = vpop.f32.mrb[22].mxu0  ;;  %1081 = vmatprep.mubr.bf16.mxu1 %v668_v16 }
 0x2bc   :  { %v647_v20 = vpack.c.bf16 %v1056_v19, %v1055_v15  ;;  %v600_v21 = vpop.f32.mrb[23].mxu0  ;;  %1082 = vmatmul.mubr.bf16.vlgmr.msra.gmra.mrb[16].mxu1 %v669_v17 }
 0x2bd   :  { %v646_v22 = vpack.c.bf16 %v600_v21, %v597_v18 }
 0x2be   :  { %v663_v23 = vadd.bf16 %v659_v8, %v647_v20 }
 0x2bf   :  { %v662_v34 = vadd.bf16 %v659_v8, %v646_v22 }
 0x2c0   :  { %v671_v27 = vmax.bf16 %v1138_v45, %v663_v23 }
 0x2c1   :  { %v1059_v24 = vpop.f32.mrb[24].mxu0  ;;  %v670_v25 = vmax.bf16 %v1138_v45, %v662_v34 }
 0x2c2   :  { %v613_v26 = vpop.f32.mrb[25].mxu0 }
 0x2c3   :  { %v1060_v28 = vpop.f32.mrb[26].mxu0  ;;  %1085 = vmatprep.mubr.bf16.mxu1 %v670_v25 }
 0x2c4   :  { %v649_v29 = vpack.c.bf16 %v1060_v28, %v1059_v24  ;;  %v616_v30 = vpop.f32.mrb[27].mxu0  ;;  %1086 = vmatmul.mubr.bf16.gmra.mrb[20].mxu1 %v671_v27 }
 0x2c5   :  { %v648_v31 = vpack.c.bf16 %v616_v30, %v613_v26 }
 0x2c6   :  { %v665_v32 = vadd.bf16 %v659_v8, %v649_v29 }
 0x2c7   :  { %v664_v33 = vadd.bf16 %v659_v8, %v648_v31 }
 0x2c8   :  { %v673_v38 = vmax.bf16 %v1138_v45, %v665_v32 }
 0x2c9   :  { %v1063_v35 = vpop.f32.mrb[28].mxu0  ;;  %v672_v36 = vmax.bf16 %v1138_v45, %v664_v33 }
 0x2ca   :  { %v629_v37 = vpop.f32.mrb[29].mxu0 }
 0x2cb   :  { %v1064_v39 = vpop.f32.mrb[30].mxu0  ;;  %1089 = vmatprep.mubr.bf16.mxu1 %v672_v36 }
 0x2cc   :  { %v651_v40 = vpack.c.bf16 %v1064_v39, %v1063_v35  ;;  %v632_v41 = vpop.f32.mrb[31].mxu0  ;;  %1090 = vmatmul.mubr.bf16.gmra.mrb[24].mxu1 %v673_v38 }
 0x2cd   :  { %v650_v42 = vpack.c.bf16 %v632_v41, %v629_v37 }
 0x2ce   :  { %v667_v43 = vadd.bf16 %v659_v8, %v651_v40 }
 0x2cf   :  { %v666_v44 = vadd.bf16 %v659_v8, %v650_v42 }
 0x2d0   :  { %v675_v47 = vmax.bf16 %v1138_v45, %v667_v43 }
 0x2d1   :  { %v674_v46 = vmax.bf16 %v1138_v45, %v666_v44 }
 0x2d3   :  { %1093 = vmatprep.mubr.bf16.mxu1 %v674_v46 }
 0x2d4   :  { %1094 = vmatmul.mubr.bf16.gmra.mrb[28].mxu1 %v675_v47 }
 0x38f   :  { %v1083_v49 = vpop.f32.mrb[16].mxu1 }
 0x390   :  { %v790_v50 = vadd.f32 %v1083_v49, %v896_v48  ;;  %v781_v51 = vpop.f32.mrb[17].mxu1 }
 0x391   :  { %v782_v52 = vadd.f32 %v896_v48, %v781_v51  ;;  %v1084_v53 = vpop.f32.mrb[18].mxu1 }
 0x392   :  { %846 = vst [vmem:[%s1407_s9 + $0x10] sm:$0xff] %v790_v50  ;;  %v793_v54 = vadd.f32 %v1084_v53, %v896_v48  ;;  %v784_v55 = vpop.f32.mrb[19].mxu1 }
 0x393   :  { %844 = vst [vmem:[%s1407_s9] sm:$0xff] %v782_v52  ;;  %v785_v45 = vadd.f32 %v896_v48, %v784_v55 }
 0x394   :  { %847 = vst [vmem:[%s1407_s9 + $0x18] sm:$0xff] %v793_v54 }
 0x395   :  { %845 = vst [vmem:[%s1407_s9 + $0x8] sm:$0xff] %v785_v45 }
 0x397   :  { %v1087_v56 = vpop.f32.mrb[20].mxu1 }
 0x398   :  { %v806_v57 = vadd.f32 %v1087_v56, %v896_v48  ;;  %v797_v58 = vpop.f32.mrb[21].mxu1 }
 0x399   :  { %v798_v59 = vadd.f32 %v896_v48, %v797_v58  ;;  %v1088_v60 = vpop.f32.mrb[22].mxu1 }
 0x39a   :  { %850 = vst [vmem:[%s1407_s9 + $0x30] sm:$0xff] %v806_v57  ;;  %v809_v61 = vadd.f32 %v1088_v60, %v896_v48  ;;  %v800_v62 = vpop.f32.mrb[23].mxu1 }
 0x39b   :  { %848 = vst [vmem:[%s1407_s9 + $0x20] sm:$0xff] %v798_v59  ;;  %v801_v63 = vadd.f32 %v896_v48, %v800_v62 }
 0x39c   :  { %851 = vst [vmem:[%s1407_s9 + $0x38] sm:$0xff] %v809_v61 }
 0x39d   :  { %849 = vst [vmem:[%s1407_s9 + $0x28] sm:$0xff] %v801_v63 }
 0x39f   :  { %v1091_v0 = vpop.f32.mrb[24].mxu1 }
 0x3a0   :  { %v822_v1 = vadd.f32 %v1091_v0, %v896_v48  ;;  %v813_v2 = vpop.f32.mrb[25].mxu1 }
 0x3a1   :  { %v814_v3 = vadd.f32 %v896_v48, %v813_v2  ;;  %v1092_v4 = vpop.f32.mrb[26].mxu1 }
 0x3a2   :  { %854 = vst [vmem:[%s1407_s9 + $0x50] sm:$0xff] %v822_v1  ;;  %v825_v5 = vadd.f32 %v1092_v4, %v896_v48  ;;  %v816_v6 = vpop.f32.mrb[27].mxu1 }
 0x3a3   :  { %852 = vst [vmem:[%s1407_s9 + $0x40] sm:$0xff] %v814_v3  ;;  %v817_v7 = vadd.f32 %v896_v48, %v816_v6 }
 0x3a4   :  { %855 = vst [vmem:[%s1407_s9 + $0x58] sm:$0xff] %v825_v5 }
 0x3a5   :  { %853 = vst [vmem:[%s1407_s9 + $0x48] sm:$0xff] %v817_v7 }
 0x3a7   :  { %v1095_v8 = vpop.f32.mrb[28].mxu1 }
 0x3a8   :  { %v838_v9 = vadd.f32 %v1095_v8, %v896_v48  ;;  %v829_v10 = vpop.f32.mrb[29].mxu1 }
 0x3a9   :  { %v830_v11 = vadd.f32 %v896_v48, %v829_v10  ;;  %v1096_v12 = vpop.f32.mrb[30].mxu1 }
 0x3aa   :  { %858 = vst [vmem:[%s1407_s9 + $0x70] sm:$0xff] %v838_v9  ;;  %v841_v13 = vadd.f32 %v1096_v12, %v896_v48  ;;  %v832_v14 = vpop.f32.mrb[31].mxu1 }
 0x3ab   :  { %856 = vst [vmem:[%s1407_s9 + $0x60] sm:$0xff] %v830_v11  ;;  %v833_v15 = vadd.f32 %v896_v48, %v832_v14 }
 0x3ac   :  { %859 = vst [vmem:[%s1407_s9 + $0x78] sm:$0xff] %v841_v13 }
 0x3ad   :  { %857 = vst [vmem:[%s1407_s9 + $0x68] sm:$0xff] %v833_v15 }

</bundles_post_ra>
